<compile_context>
chip_gen: v7x
topology: tpu7x:2x2x1
jax: 0.10.0
libtpu: 0.0.40
codegen_flags: <defaults>
</compile_context>

<pallas_src>
import jax
import jax.numpy as jnp
from jax.experimental import pallas as pl
from jax.experimental.pallas import tpu as pltpu


_VMEM_TILE_BUDGET = 32 * 1024 * 1024   # accounted working set (tiles + temps)
_VMEM_LIMIT_BYTES = 48 * 1024 * 1024   # scoped limit handed to Mosaic (headroom)
_PRED_TILE_TARGET = 4 * 1024 * 1024    # aim for ~4 MiB of pred per tile (DMA-long)


def _ccl_kernel(pred_ref, label_ref, out_ref):
    # pred_ref : (tile_n, C) native dtype (f32 / bf16 / ...), VMEM
    # label_ref: (tile_n, 1) int32, VMEM
    # out_ref  : (tile_n, 1) f32, VMEM  -- per-row softmax prob at the label
    x = pred_ref[...]                                   # native dtype tile
    lbl = label_ref[...]                                # (tile_n, 1) int32

    # Row max + label gather on the native-dtype tile (both exact).
    m = jnp.max(x, axis=1, keepdims=True)               # (tile_n, 1)
    col = jax.lax.broadcasted_iota(jnp.int32, x.shape, 1)
    picked_logit = jnp.sum(
        jnp.where(col == lbl, x, jnp.zeros_like(x)), axis=1, keepdims=True)

    # Numerically stable softmax denominator in f32 (cast fuses into the
    # exp -> reduce chain; exp goes to the EUP slot).
    xf = x.astype(jnp.float32)
    mf = m.astype(jnp.float32)
    denom = jnp.sum(jnp.exp(xf - mf), axis=1, keepdims=True)   # (tile_n, 1)

    # p[i, label[i]] = exp(x[i,label[i]] - m_i) / denom_i ; only the gathered
    # numerator is divided (no full (tile_n, C) probability tile).
    picked = jnp.exp(picked_logit.astype(jnp.float32) - mf) * pl.reciprocal(
        denom, approx=False)
    out_ref[...] = picked


def _pick_tile_n(n, c, dtype):
    """Batch tile: DMA-long (~4 MiB of pred per tile), VMEM-accurate budget,
    rounded to the dtype's native sublane packing."""
    itemsize = jnp.dtype(dtype).itemsize
    sub = max(8, 32 // itemsize)          # 8 f32/i32, 16 bf16/f16, 32 int8/fp8

    # Bytes of VMEM live per batch row:
    #   2x double-buffered pred row (native dtype)
    #   2x label row + 2x output row (1 lane each, 4 B)
    #   ~3x f32 row of in-kernel temporaries (cast/exp chain, one-hot/iota)
    bytes_per_row = 2 * c * itemsize + 2 * 4 + 2 * 4 + 3 * c * 4
    budget_rows = max(sub, _VMEM_TILE_BUDGET // bytes_per_row)
    target_rows = max(sub, _PRED_TILE_TARGET // max(1, c * itemsize))

    t = min(budget_rows, target_rows)
    t = max(sub, (t // sub) * sub)
    n_padded = ((n + sub - 1) // sub) * sub
    return min(t, n_padded)


def confidence_control_loss(pred, label, *, tile_n=None):
    """pred: (N, C) float (f32/bf16/...), label: (N,) int -> scalar f32 loss."""
    n, c = pred.shape
    if tile_n is None:
        tile_n = _pick_tile_n(n, c, pred.dtype)
    num_blocks = pl.cdiv(n, tile_n)
    label2d = label.astype(jnp.int32).reshape(n, 1)

    picked = pl.pallas_call(
        _ccl_kernel,
        out_shape=jax.ShapeDtypeStruct((n, 1), jnp.float32),
        grid_spec=pltpu.PrefetchScalarGridSpec(
            num_scalar_prefetch=0,
            grid=(num_blocks,),
            in_specs=[
                pl.BlockSpec((tile_n, c), lambda i: (i, 0)),   # pred tile
                pl.BlockSpec((tile_n, 1), lambda i: (i, 0)),   # label tile
            ],
            out_specs=pl.BlockSpec((tile_n, 1), lambda i: (i, 0)),
        ),
        compiler_params=pltpu.CompilerParams(
            dimension_semantics=("parallel",),     # independent tiles -> both TCs
            vmem_limit_bytes=_VMEM_LIMIT_BYTES,
        ),
    )(pred, label2d)

    # loss = -mean_i p[i, label[i]]  (tiny XLA reduce over N scalars)
    return -jnp.sum(picked) * jnp.float32(1.0 / n)


def _reference(pred, label):
    p = jax.nn.softmax(pred.astype(jnp.float32), axis=1)
    return -jnp.mean(p[jnp.arange(pred.shape[0]), label])


if __name__ == "__main__":
    key = jax.random.PRNGKey(0)

    # Case 1: original small shape, f32, single tile.
    k1, k2, key = jax.random.split(key, 3)
    N, C = 8, 32
    pred = jax.random.normal(k1, (N, C), dtype=jnp.float32)
    label = jax.random.randint(k2, (N,), 0, C, dtype=jnp.int32)
    loss = confidence_control_loss(pred, label)
    jax.block_until_ready(loss)
    ref = _reference(pred, label)
    assert jnp.allclose(loss, ref, atol=1e-5, rtol=1e-5), (loss, ref)

    # Case 2: N not a multiple of the sublane packing (partial block), f32.
    k1, k2, key = jax.random.split(key, 3)
    N2, C2 = 13, 160
    pred2 = jax.random.normal(k1, (N2, C2), dtype=jnp.float32)
    label2 = jax.random.randint(k2, (N2,), 0, C2, dtype=jnp.int32)
    loss2 = confidence_control_loss(pred2, label2)
    jax.block_until_ready(loss2)
    ref2 = _reference(pred2, label2)
    assert jnp.allclose(loss2, ref2, atol=1e-5, rtol=1e-5), (loss2, ref2)

    # Case 3: bf16 input, forced multi-tile parallel grid with a remainder
    # block (exercises native-dtype max/gather, per-block outputs, clipping).
    # tile_n=16 matches bf16's native (16, 128) sublane packing.
    k1, k2, key = jax.random.split(key, 3)
    N3, C3 = 40, 128
    pred3 = jax.random.normal(k1, (N3, C3), dtype=jnp.float32).astype(jnp.bfloat16)
    label3 = jax.random.randint(k2, (N3,), 0, C3, dtype=jnp.int32)
    loss3 = confidence_control_loss(pred3, label3, tile_n=16)
    jax.block_until_ready(loss3)
    ref3 = _reference(pred3, label3)
    assert jnp.allclose(loss3, ref3, atol=1e-5, rtol=1e-5), (loss3, ref3)

    print("KERNEL_OK")
</pallas_src>

<mosaic_0001>
module attributes {stable_mosaic.version = 11 : i64} {
  func.func @_ccl_kernel(%arg0: i32, %arg1: memref<8x32xf32, #tpu.memory_space<vmem>>, %arg2: memref<8x1xi32, #tpu.memory_space<vmem>>, %arg3: memref<8x1xf32, #tpu.memory_space<vmem>>) attributes {dimension_semantics = [#tpu.dimension_semantics<parallel>], iteration_bounds = array<i64: 1>, scalar_prefetch = 0 : i64, scratch_operands = 0 : i64, tpu.core_type = #tpu.core_type<tc>, window_params = [{transform_indices = @transform_0, window_bounds = array<i64: 8, 32>}, {transform_indices = @transform_1, window_bounds = array<i64: 8, 1>}, {transform_indices = @transform_2, window_bounds = array<i64: 8, 1>}]} {
    %c0 = arith.constant 0 : index
    %c0_0 = arith.constant 0 : index
    %0 = vector.load %arg1[%c0, %c0_0] : memref<8x32xf32, #tpu.memory_space<vmem>>, vector<8x32xf32>
    %c0_1 = arith.constant 0 : index
    %c0_2 = arith.constant 0 : index
    %1 = vector.load %arg2[%c0_1, %c0_2] : memref<8x1xi32, #tpu.memory_space<vmem>>, vector<8x1xi32>
    %cst = arith.constant dense<0xFF800000> : vector<8xf32>
    %2 = vector.multi_reduction <maximumf>, %0, %cst [1] : vector<8x32xf32> to vector<8xf32>
    %3 = vector.shape_cast %2 : vector<8xf32> to vector<8x1xf32>
    %4 = tpu.iota {dimensions = array<i32: 1>} : vector<8x32xi32>
    %5 = vector.broadcast %1 : vector<8x1xi32> to vector<8x32xi32>
    %6 = arith.cmpi eq, %4, %5 : vector<8x32xi32>
    %cst_3 = arith.constant 0.000000e+00 : f32
    %7 = vector.broadcast %cst_3 : f32 to vector<8x32xf32>
    %8 = arith.select %6, %0, %7 : vector<8x32xi1>, vector<8x32xf32>
    %cst_4 = arith.constant dense<0.000000e+00> : vector<8xf32>
    %9 = vector.multi_reduction <add>, %8, %cst_4 [1] : vector<8x32xf32> to vector<8xf32>
    %10 = vector.shape_cast %9 : vector<8xf32> to vector<8x1xf32>
    %11 = vector.broadcast %3 : vector<8x1xf32> to vector<8x32xf32>
    %12 = arith.subf %0, %11 : vector<8x32xf32>
    %13 = math.exp %12 : vector<8x32xf32>
    %cst_5 = arith.constant dense<0.000000e+00> : vector<8xf32>
    %14 = vector.multi_reduction <add>, %13, %cst_5 [1] : vector<8x32xf32> to vector<8xf32>
    %15 = vector.shape_cast %14 : vector<8xf32> to vector<8x1xf32>
    %16 = arith.subf %10, %3 : vector<8x1xf32>
    %17 = math.exp %16 : vector<8x1xf32>
    %18 = tpu.reciprocal %15 : vector<8x1xf32> -> vector<8x1xf32>
    %19 = arith.mulf %17, %18 : vector<8x1xf32>
    %c0_6 = arith.constant 0 : index
    %c0_7 = arith.constant 0 : index
    %20 = vector.load %arg3[%c0_6, %c0_7] : memref<8x1xf32, #tpu.memory_space<vmem>>, vector<8x1xf32>
    tpu.vector_store %arg3[%c0_6, %c0_7], %19 {strides = array<i32>} : memref<8x1xf32, #tpu.memory_space<vmem>>, vector<8x1xf32>,
    return
  }
  func.func @transform_0(%arg0: i32) -> (i32, i32) {
    %c0_i32 = arith.constant 0 : i32
    %c0_i32_0 = arith.constant 0 : i32
    return %arg0, %c0_i32 : i32, i32
  }
  func.func @transform_1(%arg0: i32) -> (i32, i32) {
    %c0_i32 = arith.constant 0 : i32
    %c0_i32_0 = arith.constant 0 : i32
    return %arg0, %c0_i32 : i32, i32
  }
  func.func @transform_2(%arg0: i32) -> (i32, i32) {
    %c0_i32 = arith.constant 0 : i32
    %c0_i32_0 = arith.constant 0 : i32
    return %arg0, %c0_i32 : i32, i32
  }
}

</mosaic_0001>

<bundles_post_ra>
// kernel: tpu_custom_call.1
= control target key start
LH: loop header
LB: loop body
LE: loop exit
PB: predicated region body
PF: predicated region fallthrough
CT: control target
= control target key end

     0   :  { %vm13_vm0 = vcmask 261120   ;;  %v52_v1 = vmov 0   ;;  %v17_v6 = vlaneseq  ;;  %vm38_vm2 = vcmask 7168   ;;  %s80_s0 = inlined_call_operand.vmem [shape: f32[8,32], index: 0, kind: input, shape index: {}]   ;;  %s81_s1 = inlined_call_operand.vmem [shape: s32[8,1], index: 1, kind: input, shape index: {}]   ;;  %s82_s2 = inlined_call_operand.vmem [shape: f32[8,1], index: 2, kind: output, shape index: {}]  }
   0x1   :  { %v11_v0 = vld [vmem:[%s80_s0] sm:$0xff]  ;;  %45 = vset.pattern.permute.xlu0 %v52_v1 }
   0x2   :  { %v14_v2 = vsel %vm13_vm0, %v11_v0, -inf  ;;  %v12_v3 = vld [vmem:[%s81_s1] sm:$0xff]  ;;  %v18_v8 = vand.u32 127, %v17_v6 }
   0x3   :  { %15 = vmax.xlane.f32.xlu0 %v14_v2 }
  0x19   :  { %20 = vperm.xlu0 %45, %v12_v3  }
  0x90   :  { %v16_v4 = vpop.xlane.xlu0 %15 }
  0x91   :  { %v27_v5 = vsub.f32 %v11_v0, %v16_v4 }
  0x93   :  { %v28_v7 = vmul.f32 1.442695, %v27_v5 }
  0x95   :  { %46 = vpow2.f32 %v28_v7 }
  0x98   :  { %v21_v9 = vpop.permute.xlu0 %20 }
  0x99   :  { %vm22_vm1 = vcmp.eq.s32.totalorder %v18_v8, %v21_v9 }
  0x9a   :  { %v23_v10 = vsel %vm22_vm1, %v11_v0, 0.0 }
  0x9b   :  { %v24_v11 = vsel %vm13_vm0, %v23_v10, 0.0 }
  0x9c   :  { %25 = vadd.xlane.f32.xlu1 %v24_v11 }
  0x9f   :  { %v47_v12 = vpop.eup %46 }
  0xa0   :  { %v30_v13 = vsel %vm13_vm0, %v47_v12, 0.0 }
  0xa1   :  { %31 = vadd.xlane.f32.xlu1 %v30_v13 }
 0x129   :  { %v26_v14 = vpop.xlane.xlu1 %25 }
 0x12a   :  { %v33_v15 = vsub.f32 %v26_v14, %v16_v4 }
 0x12c   :  { %v34_v16 = vmul.f32 1.442695, %v33_v15 }
 0x12e   :  { %48 = vpow2.f32 %v34_v16  ;;  %v32_v17 = vpop.xlane.xlu1 %31 }
 0x12f   :  { %50 = vrcp.f32 %v32_v17 }
 0x138   :  { %v49_v18 = vpop.eup %48 }
 0x139   :  { %v51_v19 = vpop.eup %50 }
 0x13a   :  { %v37_v20 = vmul.f32 %v51_v19, %v49_v18 }
 0x13c   :  { %39 = vst.msk [vmem:[%s82_s2] sm:$0xff] %vm38_vm2, %v37_v20 }

</bundles_post_ra>
